<compile_context>
chip_gen: v7x
topology: tpu7x:2x2x1
jax: 0.10.0
libtpu: 0.0.40
codegen_flags: <defaults>
</compile_context>

<pallas_src>
import jax
import jax.numpy as jnp
from jax import lax
from jax.experimental import pallas as pl
from jax.experimental.pallas import tpu as pltpu


def _sums_kernel(x_ref, y_ref, out_ref, acc_sqd, acc_x, acc_xx):
    i = pl.program_id(1)  # reduction ("arbitrary") axis over row tiles

    @pl.when(i == 0)
    def _():
        acc_sqd[...] = jnp.zeros_like(acc_sqd)
        acc_x[...] = jnp.zeros_like(acc_x)
        acc_xx[...] = jnp.zeros_like(acc_xx)

    x = x_ref[...].astype(jnp.float32)
    y = y_ref[...].astype(jnp.float32)
    d = x - y
    # Pure element-wise VPU accumulation; no cross-lane work on the hot path.
    acc_sqd[...] += d * d
    acc_x[...] += x
    acc_xx[...] += x * x

    @pl.when(i == pl.num_programs(1) - 1)
    def _():
        # One-time cross-lane reductions + a single lane-dense (1,8,128) store.
        s_sqd = jnp.sum(acc_sqd[...])
        s_x = jnp.sum(acc_x[...])
        s_xx = jnp.sum(acc_xx[...])
        lane = lax.broadcasted_iota(jnp.int32, out_ref.shape, 2)
        out_ref[...] = jnp.where(
            lane == 0, s_sqd,
            jnp.where(lane == 1, s_x,
                      jnp.where(lane == 2, s_xx, 0.0)))


def _cdiv(a, b):
    return -(-a // b)


def _round_up(a, b):
    return _cdiv(a, b) * b


def mse_minus_var(x, y):
    assert x.shape == y.shape
    D = x.shape[-1]
    N = x.size
    R = N // D  # number of rows produced by .sum(dim=-1).view(-1)

    # Lane-dense flattening parameters.
    L = 512            # multiple of 128 -> full-width unmasked vector loads
    MAX_TILE_R = 512   # (512, 512) f32 = 1 MiB per input block

    rows = _cdiv(N, L)
    # Leading "parallel" axis: 2-way split across v7x TensorCores; for tiny
    # inputs collapse to a single core (avoids pointless padding/steps).
    ncores = 2 if rows >= 16 else 1

    rows_per_core = _cdiv(rows, ncores)
    tile_r = min(MAX_TILE_R, _round_up(rows_per_core, 8))  # multiple of 8
    n_row_tiles = _cdiv(rows_per_core, tile_r)
    rows_per_core = n_row_tiles * tile_r
    rows_padded = rows_per_core * ncores
    n_padded = rows_padded * L

    xf = x.reshape(-1)
    yf = y.reshape(-1)
    if n_padded != N:
        # Zero padding contributes 0 to all three sums -> semantics preserved.
        xf = jnp.pad(xf, (0, n_padded - N))
        yf = jnp.pad(yf, (0, n_padded - N))
    x2d = xf.reshape(rows_padded, L)
    y2d = yf.reshape(rows_padded, L)

    in_spec = pl.BlockSpec((tile_r, L), lambda c, i: (c * n_row_tiles + i, 0))
    out_spec = pl.BlockSpec((1, 8, 128), lambda c, i: (c, 0, 0))

    partials = pl.pallas_call(
        _sums_kernel,
        out_shape=jax.ShapeDtypeStruct((ncores, 8, 128), jnp.float32),
        grid_spec=pltpu.PrefetchScalarGridSpec(
            num_scalar_prefetch=0,
            grid=(ncores, n_row_tiles),
            in_specs=[in_spec, in_spec],
            out_specs=out_spec,
            scratch_shapes=[
                pltpu.VMEM((tile_r, L), jnp.float32),
                pltpu.VMEM((tile_r, L), jnp.float32),
                pltpu.VMEM((tile_r, L), jnp.float32),
            ],
        ),
        compiler_params=pltpu.CompilerParams(
            dimension_semantics=("parallel", "arbitrary"),
        ),
    )(x2d, y2d)

    # Combine per-core partials (lane 0: sum((x-y)^2), lane 1: sum(x), lane 2: sum(x^2)).
    s_sqd = jnp.sum(partials[:, 0, 0])
    s_x = jnp.sum(partials[:, 0, 1])
    s_xx = jnp.sum(partials[:, 0, 2])

    numel = float(N)
    loss_mean = s_sqd / float(R)     # mean over all-but-last dims
    mean_x = s_x / numel
    # Unbiased variance (torch.var default). Naive f32 sum-of-squares formula;
    # fine for loss-scale data (a shifted sum would help badly-offset inputs).
    # NB: numel == 1 divides by zero, matching torch's NaN behavior.
    var_x = (s_xx - numel * mean_x * mean_x) / (numel - 1.0)
    return loss_mean - var_x


def _reference(x, y):
    d = (x - y) ** 2
    loss = d.sum(axis=-1).reshape(-1)
    n = x.size
    var = jnp.var(x) * n / (n - 1)  # unbiased
    return loss.mean() - var


if __name__ == "__main__":
    key = jax.random.PRNGKey(0)
    kx, ky = jax.random.split(key)
    x = jax.random.normal(kx, (2, 4, 16, 16), dtype=jnp.float32)
    y = jax.random.normal(ky, (2, 4, 16, 16), dtype=jnp.float32)

    out = mse_minus_var(x, y)
    out = jax.block_until_ready(out)

    ref = _reference(x, y)
    assert jnp.allclose(out, ref, rtol=1e-4, atol=1e-4), (out, ref)
    print("KERNEL_OK")
</pallas_src>

<mosaic_0001>
module attributes {stable_mosaic.version = 11 : i64} {
  func.func @_sums_kernel(%arg0: i32, %arg1: i32, %arg2: memref<8x512xf32, #tpu.memory_space<vmem>>, %arg3: memref<8x512xf32, #tpu.memory_space<vmem>>, %arg4: memref<1x8x128xf32, #tpu.memory_space<vmem>>, %arg5: memref<8x512xf32, #tpu.memory_space<vmem>>, %arg6: memref<8x512xf32, #tpu.memory_space<vmem>>, %arg7: memref<8x512xf32, #tpu.memory_space<vmem>>) attributes {dimension_semantics = [#tpu.dimension_semantics<parallel>, #tpu.dimension_semantics<arbitrary>], iteration_bounds = array<i64: 1, 1>, scalar_prefetch = 0 : i64, scratch_operands = 3 : i64, tpu.core_type = #tpu.core_type<tc>, window_params = [{transform_indices = @transform_0, window_bounds = array<i64: 8, 512>}, {transform_indices = @transform_1, window_bounds = array<i64: 8, 512>}, {transform_indices = @transform_2, window_bounds = array<i64: 1, 8, 128>}]} {
    %c0_i32 = arith.constant 0 : i32
    %0 = arith.cmpi eq, %arg1, %c0_i32 : i32
    %1 = arith.extui %0 : i1 to i32
    %c0_i32_0 = arith.constant 0 : i32
    %2 = arith.cmpi ne, %1, %c0_i32_0 : i32
    scf.if %2 {
      %cst = arith.constant 0.000000e+00 : f32
      %20 = vector.broadcast %cst : f32 to vector<8x512xf32>
      %c0_18 = arith.constant 0 : index
      %c0_19 = arith.constant 0 : index
      %21 = vector.load %arg5[%c0_18, %c0_19] : memref<8x512xf32, #tpu.memory_space<vmem>>, vector<8x512xf32>
      tpu.vector_store %arg5[%c0_18, %c0_19], %20 {strides = array<i32>} : memref<8x512xf32, #tpu.memory_space<vmem>>, vector<8x512xf32>,
      %cst_20 = arith.constant 0.000000e+00 : f32
      %22 = vector.broadcast %cst_20 : f32 to vector<8x512xf32>
      %c0_21 = arith.constant 0 : index
      %c0_22 = arith.constant 0 : index
      %23 = vector.load %arg6[%c0_21, %c0_22] : memref<8x512xf32, #tpu.memory_space<vmem>>, vector<8x512xf32>
      tpu.vector_store %arg6[%c0_21, %c0_22], %22 {strides = array<i32>} : memref<8x512xf32, #tpu.memory_space<vmem>>, vector<8x512xf32>,
      %cst_23 = arith.constant 0.000000e+00 : f32
      %24 = vector.broadcast %cst_23 : f32 to vector<8x512xf32>
      %c0_24 = arith.constant 0 : index
      %c0_25 = arith.constant 0 : index
      %25 = vector.load %arg7[%c0_24, %c0_25] : memref<8x512xf32, #tpu.memory_space<vmem>>, vector<8x512xf32>
      tpu.vector_store %arg7[%c0_24, %c0_25], %24 {strides = array<i32>} : memref<8x512xf32, #tpu.memory_space<vmem>>, vector<8x512xf32>,
    } else {
    }
    %c0 = arith.constant 0 : index
    %c0_1 = arith.constant 0 : index
    %3 = vector.load %arg2[%c0, %c0_1] : memref<8x512xf32, #tpu.memory_space<vmem>>, vector<8x512xf32>
    %c0_2 = arith.constant 0 : index
    %c0_3 = arith.constant 0 : index
    %4 = vector.load %arg3[%c0_2, %c0_3] : memref<8x512xf32, #tpu.memory_space<vmem>>, vector<8x512xf32>
    %5 = arith.subf %3, %4 : vector<8x512xf32>
    %c0_4 = arith.constant 0 : index
    %c0_5 = arith.constant 0 : index
    %6 = vector.load %arg5[%c0_4, %c0_5] : memref<8x512xf32, #tpu.memory_space<vmem>>, vector<8x512xf32>
    %7 = arith.mulf %5, %5 : vector<8x512xf32>
    %8 = arith.addf %6, %7 : vector<8x512xf32>
    %c0_6 = arith.constant 0 : index
    %c0_7 = arith.constant 0 : index
    %9 = vector.load %arg5[%c0_6, %c0_7] : memref<8x512xf32, #tpu.memory_space<vmem>>, vector<8x512xf32>
    tpu.vector_store %arg5[%c0_6, %c0_7], %8 {strides = array<i32>} : memref<8x512xf32, #tpu.memory_space<vmem>>, vector<8x512xf32>,
    %c0_8 = arith.constant 0 : index
    %c0_9 = arith.constant 0 : index
    %10 = vector.load %arg6[%c0_8, %c0_9] : memref<8x512xf32, #tpu.memory_space<vmem>>, vector<8x512xf32>
    %11 = arith.addf %10, %3 : vector<8x512xf32>
    %c0_10 = arith.constant 0 : index
    %c0_11 = arith.constant 0 : index
    %12 = vector.load %arg6[%c0_10, %c0_11] : memref<8x512xf32, #tpu.memory_space<vmem>>, vector<8x512xf32>
    tpu.vector_store %arg6[%c0_10, %c0_11], %11 {strides = array<i32>} : memref<8x512xf32, #tpu.memory_space<vmem>>, vector<8x512xf32>,
    %c0_12 = arith.constant 0 : index
    %c0_13 = arith.constant 0 : index
    %13 = vector.load %arg7[%c0_12, %c0_13] : memref<8x512xf32, #tpu.memory_space<vmem>>, vector<8x512xf32>
    %14 = arith.mulf %3, %3 : vector<8x512xf32>
    %15 = arith.addf %13, %14 : vector<8x512xf32>
    %c0_14 = arith.constant 0 : index
    %c0_15 = arith.constant 0 : index
    %16 = vector.load %arg7[%c0_14, %c0_15] : memref<8x512xf32, #tpu.memory_space<vmem>>, vector<8x512xf32>
    tpu.vector_store %arg7[%c0_14, %c0_15], %15 {strides = array<i32>} : memref<8x512xf32, #tpu.memory_space<vmem>>, vector<8x512xf32>,
    %c0_i32_16 = arith.constant 0 : i32
    %17 = arith.cmpi eq, %arg1, %c0_i32_16 : i32
    %18 = arith.extui %17 : i1 to i32
    %c0_i32_17 = arith.constant 0 : i32
    %19 = arith.cmpi ne, %18, %c0_i32_17 : i32
    scf.if %19 {
      %c0_18 = arith.constant 0 : index
      %c0_19 = arith.constant 0 : index
      %20 = vector.load %arg5[%c0_18, %c0_19] : memref<8x512xf32, #tpu.memory_space<vmem>>, vector<8x512xf32>
      %21 = vector.shape_cast %20 : vector<8x512xf32> to vector<1x8x512xf32>
      %cst = arith.constant dense<0.000000e+00> : vector<1xf32>
      %22 = vector.multi_reduction <add>, %21, %cst [1, 2] : vector<1x8x512xf32> to vector<1xf32>
      %23 = vector.shape_cast %22 : vector<1xf32> to vector<1x1x1xf32>
      %24 = vector.extract %23[0, 0, 0] : f32 from vector<1x1x1xf32>
      %c0_20 = arith.constant 0 : index
      %c0_21 = arith.constant 0 : index
      %25 = vector.load %arg6[%c0_20, %c0_21] : memref<8x512xf32, #tpu.memory_space<vmem>>, vector<8x512xf32>
      %26 = vector.shape_cast %25 : vector<8x512xf32> to vector<1x8x512xf32>
      %cst_22 = arith.constant dense<0.000000e+00> : vector<1xf32>
      %27 = vector.multi_reduction <add>, %26, %cst_22 [1, 2] : vector<1x8x512xf32> to vector<1xf32>
      %28 = vector.shape_cast %27 : vector<1xf32> to vector<1x1x1xf32>
      %29 = vector.extract %28[0, 0, 0] : f32 from vector<1x1x1xf32>
      %c0_23 = arith.constant 0 : index
      %c0_24 = arith.constant 0 : index
      %30 = vector.load %arg7[%c0_23, %c0_24] : memref<8x512xf32, #tpu.memory_space<vmem>>, vector<8x512xf32>
      %31 = vector.shape_cast %30 : vector<8x512xf32> to vector<1x8x512xf32>
      %cst_25 = arith.constant dense<0.000000e+00> : vector<1xf32>
      %32 = vector.multi_reduction <add>, %31, %cst_25 [1, 2] : vector<1x8x512xf32> to vector<1xf32>
      %33 = vector.shape_cast %32 : vector<1xf32> to vector<1x1x1xf32>
      %34 = vector.extract %33[0, 0, 0] : f32 from vector<1x1x1xf32>
      %35 = tpu.iota {dimensions = array<i32: 2>} : vector<1x8x128xi32>
      %c0_i32_26 = arith.constant 0 : i32
      %36 = vector.broadcast %c0_i32_26 : i32 to vector<1x8x128xi32>
      %37 = arith.cmpi eq, %35, %36 : vector<1x8x128xi32>
      %c1_i32 = arith.constant 1 : i32
      %38 = vector.broadcast %c1_i32 : i32 to vector<1x8x128xi32>
      %39 = arith.cmpi eq, %35, %38 : vector<1x8x128xi32>
      %c2_i32 = arith.constant 2 : i32
      %40 = vector.broadcast %c2_i32 : i32 to vector<1x8x128xi32>
      %41 = arith.cmpi eq, %35, %40 : vector<1x8x128xi32>
      %cst_27 = arith.constant 0.000000e+00 : f32
      %42 = vector.broadcast %34 : f32 to vector<1x8x128xf32>
      %43 = vector.broadcast %cst_27 : f32 to vector<1x8x128xf32>
      %44 = arith.select %41, %42, %43 : vector<1x8x128xi1>, vector<1x8x128xf32>
      %45 = vector.broadcast %29 : f32 to vector<1x8x128xf32>
      %46 = arith.select %39, %45, %44 : vector<1x8x128xi1>, vector<1x8x128xf32>
      %47 = vector.broadcast %24 : f32 to vector<1x8x128xf32>
      %48 = arith.select %37, %47, %46 : vector<1x8x128xi1>, vector<1x8x128xf32>
      %c0_28 = arith.constant 0 : index
      %c0_29 = arith.constant 0 : index
      %c0_30 = arith.constant 0 : index
      %49 = vector.load %arg4[%c0_28, %c0_29, %c0_30] : memref<1x8x128xf32, #tpu.memory_space<vmem>>, vector<1x8x128xf32>
      tpu.vector_store %arg4[%c0_28, %c0_29, %c0_30], %48 {strides = array<i32>} : memref<1x8x128xf32, #tpu.memory_space<vmem>>, vector<1x8x128xf32>,
    } else {
    }
    return
  }
  func.func @transform_0(%arg0: i32, %arg1: i32) -> (i32, i32) {
    %c1_i32 = arith.constant 1 : i32
    %0 = arith.muli %arg0, %c1_i32 : i32
    %1 = arith.addi %0, %arg1 : i32
    %c0_i32 = arith.constant 0 : i32
    %c0_i32_0 = arith.constant 0 : i32
    return %1, %c0_i32 : i32, i32
  }
  func.func @transform_1(%arg0: i32, %arg1: i32) -> (i32, i32) {
    %c1_i32 = arith.constant 1 : i32
    %0 = arith.muli %arg0, %c1_i32 : i32
    %1 = arith.addi %0, %arg1 : i32
    %c0_i32 = arith.constant 0 : i32
    %c0_i32_0 = arith.constant 0 : i32
    return %1, %c0_i32 : i32, i32
  }
  func.func @transform_2(%arg0: i32, %arg1: i32) -> (i32, i32, i32) {
    %c0_i32 = arith.constant 0 : i32
    %c0_i32_0 = arith.constant 0 : i32
    %c0_i32_1 = arith.constant 0 : i32
    return %arg0, %c0_i32, %c0_i32_0 : i32, i32, i32
  }
}

</mosaic_0001>

<bundles_post_ra>
// kernel: tpu_custom_call.1
= control target key start
LH: loop header
LB: loop body
LE: loop exit
PB: predicated region body
PF: predicated region fallthrough
CT: control target
= control target key end

     0   :  { %7 = vsyncpa [#allocation6], 0  ;;  %s332_s0 = inlined_call_operand.hbm [shape: f32[8,512], index: 0, kind: input, shape index: {}]   ;;  %s333_s1 = inlined_call_operand.hbm [shape: f32[8,512], index: 1, kind: input, shape index: {}]   ;;  %s334_s2 = inlined_call_operand.hbm [shape: f32[1,8,128], index: 2, kind: output, shape index: {}]  }
   0x1   :  { %8 = vsyncpa [#allocation9], 0 }
   0x2   :  { %9 = vsyncpa [#allocation7], 0  ;;  %s278_s9 = smov [#allocation5]   ;;  %s279_s11 = smov [#allocation8]  }
   0x3   :  { %s20_s10 = sshll.u32 %s278_s9, 4  ;;  %s34_s12 = sshll.u32 %s279_s11, 4  ;;  %s21_s10 = int_to_ptr.vmem [resolvable:$true] %s20_s10  ;;  %s35_s12 = int_to_ptr.vmem [resolvable:$true] %s34_s12 }
   0x4   :  { %s206_s15 = scalar_lea.hbm %s332_s0, 512 }
   0x5   :  { %p207_p0 = scmp.ne.s32.totalorder %s332_s0, %s206_s15  ;;  %p210_p1 = scmp.lt.u32.totalorder %s206_s15, %s332_s0 }
   0x7   :  { %p212_p2 = pnand %p210_p1, %p207_p0 }
   0x9   :  { %215 = shalt.err (!%p212_p2)
}
   0xa   :  { %s216_s20 = scalar_lea.vmem %s21_s10, 512  ;;  %p221_p4 = scmp.lt.s32.totalorder %s21_s10, %s21_s10 }
   0xb   :  { %p217_p3 = scmp.ne.s32.totalorder %s21_s10, %s216_s20  ;;  %p222_p5 = scmp.lt.s32.totalorder %s216_s20, %s216_s20 }
   0xd   :  { %p223_p6 = por %p222_p5, %p221_p4 }
   0xf   :  { %p224_p7 = pnand %p223_p6, %p217_p3 }
  0x11   :  { %227 = shalt.err (!%p224_p7)
}
  0x12   :  { %23 = dma.hbm_to_vmem [thread:$0]  %s332_s0, 512, %s21_s10, [#allocation6]  }
  0x13   :  { %s228_s25 = scalar_lea.hbm %s333_s1, 512 }
  0x14   :  { %p229_p8 = scmp.ne.s32.totalorder %s333_s1, %s228_s25  ;;  %p232_p9 = scmp.lt.u32.totalorder %s228_s25, %s333_s1 }
  0x16   :  { %p234_p10 = pnand %p232_p9, %p229_p8 }
  0x18   :  { %237 = shalt.err (!%p234_p10)
}
  0x19   :  { %s238_s30 = scalar_lea.vmem %s35_s12, 512  ;;  %p243_p12 = scmp.lt.s32.totalorder %s35_s12, %s35_s12 }
  0x1a   :  { %p239_p11 = scmp.ne.s32.totalorder %s35_s12, %s238_s30  ;;  %p244_p13 = scmp.lt.s32.totalorder %s238_s30, %s238_s30 }
  0x1c   :  { %p245_p0 = por %p244_p13, %p243_p12 }
  0x1e   :  { %p246_p1 = pnand %p245_p0, %p239_p11 }
  0x20   :  { %249 = shalt.err (!%p246_p1)
}
  0x21   :  { %37 = dma.hbm_to_vmem [thread:$0]  %s333_s1, 512, %s35_s12, [#allocation9]  }
  0x22   :  { %272 = dma.done.wait [#allocation6], 512  }
  0x23   :  { %273 = vsyncadd [#allocation6], 4294966784 }
  0x24   :  { %274 = dma.done.wait [#allocation9], 512  }
  0x25   :  { %275 = vsyncadd [#allocation9], 4294966784  ;;  %v62_v0 = vld [vmem:[#allocation5] sm:$0xff]  ;;  %v63_v1 = vld [vmem:[#allocation5 + $0x8] sm:$0xff]  ;;  %v169_v50 = vlaneseq  ;;  %s280_s6 = smov [#allocation10]  }
  0x26   :  { %v64_v2 = vld [vmem:[#allocation5 + $0x10] sm:$0xff]  ;;  %v65_v3 = vld [vmem:[#allocation5 + $0x18] sm:$0xff]  ;;  %v106_v4 = vmul.f32 %v62_v0, %v62_v0  ;;  %v107_v5 = vmul.f32 %v63_v1, %v63_v1  ;;  %v66_v7 = vld [vmem:[#allocation8] sm:$0xff]  ;;  %v141_v19 = vadd.f32 %v63_v1, %v62_v0  ;;  %s187_s7 = sshll.u32 %s280_s6, 4  ;;  %s188_s7 = int_to_ptr.vmem [resolvable:$true] %s187_s7 }
  0x27   :  { %v108_v6 = vmul.f32 %v64_v2, %v64_v2  ;;  %v67_v8 = vld [vmem:[#allocation8 + $0x8] sm:$0xff]  ;;  %v68_v9 = vld [vmem:[#allocation8 + $0x10] sm:$0xff]  ;;  %v69_v10 = vld [vmem:[#allocation8 + $0x18] sm:$0xff]  ;;  %v70_v11 = vsub.f32 %v62_v0, %v66_v7  ;;  %v109_v13 = vmul.f32 %v65_v3, %v65_v3  ;;  %v170_v51 = vand.u32 127, %v169_v50  ;;  %s250_s8 = scalar_lea.vmem %s188_s7, 128  ;;  %p255_p3 = scmp.lt.s32.totalorder %s188_s7, %s188_s7 }
  0x28   :  { %v71_v12 = vsub.f32 %v63_v1, %v67_v8  ;;  %v157_v14 = vadd.f32 %v107_v5, %v106_v4  ;;  %v72_v15 = vsub.f32 %v64_v2, %v68_v9  ;;  %v73_v16 = vsub.f32 %v65_v3, %v69_v10  ;;  %p251_p2 = scmp.ne.s32.totalorder %s188_s7, %s250_s8  ;;  %p256_p4 = scmp.lt.s32.totalorder %s250_s8, %s250_s8 }
  0x29   :  { %v78_v17 = vmul.f32 %v70_v11, %v70_v11  ;;  %v142_v26 = vadd.f32 %v141_v19, %v64_v2  ;;  %vm173_vm0 = vcmp.eq.s32.totalorder %v170_v51, 2  ;;  %vm172_vm1 = vcmp.eq.s32.totalorder %v170_v51, 1 }
  0x2a   :  { %v79_v18 = vmul.f32 %v71_v12, %v71_v12  ;;  %v158_v20 = vadd.f32 %v157_v14, %v108_v6  ;;  %v80_v21 = vmul.f32 %v72_v15, %v72_v15  ;;  %v81_v22 = vmul.f32 %v73_v16, %v73_v16  ;;  %p257_p5 = por %p256_p4, %p255_p3 }
  0x2b   :  { %v143_v28 = vadd.f32 %v142_v26, %v65_v3  ;;  %vm171_vm2 = vcmp.eq.s32.totalorder %v170_v51, 0 }
  0x2c   :  { %v125_v23 = vadd.f32 %v79_v18, %v78_v17  ;;  %v159_v24 = vadd.f32 %v158_v20, %v109_v13  ;;  %p258_p6 = pnand %p257_p5, %p251_p2 }
  0x2e   :  { %v126_v25 = vadd.f32 %v125_v23, %v80_v21  ;;  %160 = vadd.xlane.f32.xlu1 %v159_v24 }
  0x30   :  { %v127_v27 = vadd.f32 %v126_v25, %v81_v22 }
  0x32   :  { %128 = vadd.xlane.f32.xlu0 %v127_v27 }
  0x36   :  { %144 = vadd.xlane.f32.xlu0 %v143_v28 }
  0xbb   :  { %v161_v29 = vpop.xlane.xlu1 %160 }
  0xbc   :  { %v162_v30 = vrot.slane %v161_v29, 4 }
  0xbe   :  { %v163_v31 = vadd.f32 %v162_v30, %v161_v29 }
  0xbf   :  { %v129_v32 = vpop.xlane.xlu0 %128 }
  0xc0   :  { %v130_v33 = vrot.slane %v129_v32, 4  ;;  %v164_v35 = vrot.slane %v163_v31, 2 }
  0xc2   :  { %v131_v34 = vadd.f32 %v130_v33, %v129_v32  ;;  %v165_v41 = vadd.f32 %v164_v35, %v163_v31 }
  0xc3   :  { %v145_v36 = vpop.xlane.xlu0 %144 }
  0xc4   :  { %v132_v37 = vrot.slane %v131_v34, 2  ;;  %v146_v38 = vrot.slane %v145_v36, 4  ;;  %v166_v46 = vrot.slane %v165_v41, 1 }
  0xc6   :  { %v147_v39 = vadd.f32 %v146_v38, %v145_v36  ;;  %v133_v40 = vadd.f32 %v132_v37, %v131_v34  ;;  %v167_v49 = vadd.f32 %v166_v46, %v165_v41 }
  0xc8   :  { %v148_v42 = vrot.slane %v147_v39, 2  ;;  %v134_v43 = vrot.slane %v133_v40, 1 }
  0xca   :  { %v149_v44 = vadd.f32 %v148_v42, %v147_v39  ;;  %v135_v45 = vadd.f32 %v134_v43, %v133_v40 }
  0xcc   :  { %197 = vpush %v135_v45  ;;  %v150_v47 = vrot.slane %v149_v44, 1 }
  0xce   :  { %v151_v48 = vadd.f32 %v150_v47, %v149_v44 }
  0xd0   :  { %199 = vpush %v151_v48 }
  0xd1   :  { %201 = vpush %v167_v49 }
  0xfd   :  { %s198_s1 = spop %197 }
  0xfe   :  { %v178_v55 = vstv %s198_s1 }
 0x101   :  { %s200_s4 = spop %199 }
 0x102   :  { %v176_v52 = vstv %s200_s4  ;;  %s202_s5 = spop %201 }
 0x103   :  { %v174_v53 = vstv %s202_s5 }
 0x104   :  { %v175_v54 = vsel %vm173_vm0, %v174_v53, 0.0 }
 0x105   :  { %v177_v56 = vsel %vm172_vm1, %v176_v52, %v175_v54 }
 0x106   :  { %v179_v57 = vsel %vm171_vm2, %v178_v55, %v177_v56 }
 0x107   :  { %180 = vst [vmem:[#allocation10] sm:$0xff] %v179_v57 }
 0x108   :  { %261 = shalt.err (!%p258_p6)
}
 0x109   :  { %s262_s11 = scalar_lea.hbm %s334_s2, 128 }
 0x10a   :  { %p263_p7 = scmp.ne.s32.totalorder %s334_s2, %s262_s11  ;;  %p266_p8 = scmp.lt.u32.totalorder %s262_s11, %s334_s2 }
 0x10c   :  { %p268_p9 = pnand %p266_p8, %p263_p7 }
 0x10e   :  { %271 = shalt.err (!%p268_p9)
}
 0x10f   :  { %190 = dma.vmem_to_hbm [thread:$0]  %s188_s7, 128, %s334_s2, [#allocation7]  }
 0x110   :  { %276 = dma.done.wait [#allocation7], 128  }
 0x111   :  { %277 = vsyncadd [#allocation7], 4294967168 }
 0x112   :  { %194 = vsyncpa [#allocation6], 1 }
 0x113   :  { %195 = vsyncpa [#allocation9], 1 }
 0x114   :  { %196 = vsyncpa [#allocation7], 1 }

</bundles_post_ra>
